<compile_context>
chip_gen: v7x
topology: tpu7x:2x2x1
jax: 0.10.0
libtpu: 0.0.40
codegen_flags: <defaults>
</compile_context>

<pallas_src>
import functools

import jax
import jax.numpy as jnp
from jax.experimental import pallas as pl
from jax.experimental.pallas import tpu as pltpu

_HI = jax.lax.Precision.HIGHEST  # keep the 0/1-mask matmuls f32-accurate


# --------------------------------------------------------------------------
# Kernels.  All tiles are flat (block_rows, C) with C = pack * D lanes.
# --------------------------------------------------------------------------
def _dot_kernel(l_ref, r_ref, mrow_ref, o_ref):
    # out[n] = sum_d L[n,d] * R[n,d]; mrow is the (C, pack) per-packed-row
    # segment-sum mask, so the result lands as (block_rows, pack).
    prod = l_ref[...].astype(jnp.float32) * r_ref[...].astype(jnp.float32)
    o_ref[...] = jnp.dot(prod, mrow_ref[...], precision=_HI,
                         preferred_element_type=jnp.float32)


def _slot_all_kernel(l_ref, r_ref, w_ref, mrow_ref, o_ref):
    # sum_{s,t,k} L[n,s,k] R[n,k,t] = sum_{d2} (L @ W)[n,d2] * R[n,d2]
    # with W[d1,d2] = [d1 % Dp == d2 // S]  (block-diagonal per packed row).
    L = l_ref[...].astype(jnp.float32)
    R = r_ref[...].astype(jnp.float32)
    lw = jnp.dot(L, w_ref[...], precision=_HI,
                 preferred_element_type=jnp.float32)
    o_ref[...] = jnp.dot(lw * R, mrow_ref[...], precision=_HI,
                         preferred_element_type=jnp.float32)


def _slot_diag_kernel(l_ref, r_ref, perm_ref, mseg_ref, o_ref, *,
                      slot_num, pack, prod_aggr, sigmoid):
    # diag[n,s] = sum_k L[n, s*Dp+k] * R[n, k*S+s]
    #           = segment-sum over Dp lanes of  L * (R @ Pperm)
    L = l_ref[...].astype(jnp.float32)
    R = r_ref[...].astype(jnp.float32)
    r_perm = jnp.dot(R, perm_ref[...], precision=_HI,
                     preferred_element_type=jnp.float32)
    # slot-major layout: diag[:, s*pack + p] = diag of logical row (pack*r + p)
    diag = jnp.dot(L * r_perm, mseg_ref[...], precision=_HI,
                   preferred_element_type=jnp.float32)     # (TR, S*pack)
    if sigmoid == "before":
        diag = jax.nn.sigmoid(diag)
    acc = diag[:, 0:pack]
    for s in range(1, slot_num):
        blk = diag[:, s * pack:(s + 1) * pack]
        acc = jnp.maximum(acc, blk) if prod_aggr == "max" else acc + blk
    if prod_aggr == "mean":
        acc = acc * (1.0 / slot_num)
    o_ref[...] = acc


# --------------------------------------------------------------------------
# Static 0/1 mask builders (tiny; DMA'd once, block index never changes).
# Packed column c <-> (row-in-pack p = c // D, feature d = c % D).
# --------------------------------------------------------------------------
def _mask_rowsum(C, D, P):
    c = jnp.arange(C)[:, None]
    j = jnp.arange(P)[None, :]
    return ((c // D) == j).astype(jnp.float32)                      # (C, P)


def _mask_all(C, D, P, S, Dp):
    c1 = jnp.arange(C)[:, None]
    c2 = jnp.arange(C)[None, :]
    same = (c1 // D) == (c2 // D)
    w = ((c1 % D) % Dp) == ((c2 % D) // S)
    return (same & w).astype(jnp.float32)                           # (C, C)


def _mask_perm(C, D, P, S, Dp):
    # Pperm[c1, c2] = 1  iff  (R @ Pperm)[:, c2] == R[:, c1] with
    # c1 % D == k*S + s for c2 % D == s*Dp + k (same packed row).
    c1 = jnp.arange(C)[:, None]
    c2 = jnp.arange(C)[None, :]
    same = (c1 // D) == (c2 // D)
    d1, d2 = c1 % D, c2 % D
    perm = (d2 % Dp) * S + (d2 // Dp)
    return (same & (d1 == perm)).astype(jnp.float32)                # (C, C)


def _mask_seg(C, D, P, S, Dp):
    # slot-major segment-sum: column j = s*P + p
    c = jnp.arange(C)[:, None]
    j = jnp.arange(S * P)[None, :]
    return (((c // D) == (j % P)) &
            (((c % D) // Dp) == (j // P))).astype(jnp.float32)      # (C, S*P)


# --------------------------------------------------------------------------
# Wrapper
# --------------------------------------------------------------------------
def _round_up(x, m):
    return ((x + m - 1) // m) * m


def dot_forward(left_emb, right_emb, r_id=None, slot_num=None,
                prod_aggr=None, sigmoid="after", block_rows=None):
    """Pallas implementation of Dot.forward.  Returns (N,) float32."""
    del r_id  # unused in the reference forward
    N, D = left_emb.shape
    assert right_emb.shape == (N, D)

    # Lane packing: P logical rows per 128-lane vreg row when possible.
    P = 128 // D if (D < 128 and 128 % D == 0) else 1
    C = P * D
    c_pad = _round_up(max(C, 128), 128)

    np_rows = -(-N // P)  # packed rows before padding
    if block_rows is None:
        # ~1 MiB per input per pipeline buffer -> 2 in x 2 buf ~= 4 MiB, well
        # inside the 16 MiB v5e scoped-VMEM default (and v6e/v7x budgets),
        # while large N still yields many grid steps for DMA/compute overlap.
        block_rows = max(8, min(4096, ((1 << 20) // (4 * c_pad)) // 8 * 8))
    block_rows = _round_up(min(block_rows, _round_up(np_rows, 8)), 8)
    np_pad = _round_up(np_rows, block_rows)
    n_pad = np_pad * P
    grid = (np_pad // block_rows,)

    def prep(x):
        if n_pad != N:
            x = jnp.pad(x, ((0, n_pad - N), (0, 0)))  # only when N is ragged
        return x.reshape(np_pad, C)                    # free row-major reshape

    Lp = prep(left_emb)
    Rp = prep(right_emb)

    row_spec = pl.BlockSpec((block_rows, C), lambda i: (i, 0))
    out_spec = pl.BlockSpec((block_rows, P), lambda i: (i, 0))
    out_shape = jax.ShapeDtypeStruct((np_pad, P), jnp.float32)

    if not prod_aggr:
        mrow = _mask_rowsum(C, D, P)
        kernel = _dot_kernel
        args = (Lp, Rp, mrow)
        in_specs = [row_spec, row_spec,
                    pl.BlockSpec(mrow.shape, lambda i: (0, 0))]
    else:
        assert slot_num is not None and D % slot_num == 0
        S = slot_num
        Dp = D // S
        if prod_aggr == "all":
            w = _mask_all(C, D, P, S, Dp)
            mrow = _mask_rowsum(C, D, P)
            kernel = _slot_all_kernel
            args = (Lp, Rp, w, mrow)
            in_specs = [row_spec, row_spec,
                        pl.BlockSpec(w.shape, lambda i: (0, 0)),
                        pl.BlockSpec(mrow.shape, lambda i: (0, 0))]
        elif prod_aggr in ("sum", "mean", "max"):
            perm = _mask_perm(C, D, P, S, Dp)
            mseg = _mask_seg(C, D, P, S, Dp)
            kernel = functools.partial(_slot_diag_kernel, slot_num=S, pack=P,
                                       prod_aggr=prod_aggr, sigmoid=sigmoid)
            args = (Lp, Rp, perm, mseg)
            in_specs = [row_spec, row_spec,
                        pl.BlockSpec(perm.shape, lambda i: (0, 0)),
                        pl.BlockSpec(mseg.shape, lambda i: (0, 0))]
        else:
            raise Exception()

    out = pl.pallas_call(
        kernel,
        out_shape=out_shape,
        grid=grid,
        in_specs=in_specs,
        out_specs=out_spec,
        compiler_params=pltpu.CompilerParams(
            dimension_semantics=("parallel",)),
    )(*args)

    # (np_pad, P) row-major == logical row order; drop padded rows.
    return out.reshape(-1)[:N]


# ---------------- pure-JAX reference (mirrors the torch code) ----------------
def dot_reference(left_emb, right_emb, slot_num=None, prod_aggr=None,
                  sigmoid="after"):
    N, D = left_emb.shape
    if not prod_aggr:
        return jnp.einsum("nd,nd->n", left_emb, right_emb, precision="highest")
    S = slot_num
    Dp = D // S
    L = left_emb.reshape(N, S, Dp)
    R = right_emb.reshape(N, Dp, S)
    x = jnp.einsum("nsk,nkt->nst", L, R, precision="highest")
    if prod_aggr == "all":
        return x.reshape(N, -1).sum(1)
    diag = jnp.diagonal(x, 0, 1, 2)           # (N, S)
    if sigmoid == "before":
        diag = jax.nn.sigmoid(diag)
    if prod_aggr == "mean":
        return diag.mean(1)
    if prod_aggr == "max":
        return diag.max(1)
    if prod_aggr == "sum":
        return diag.sum(1)
    raise Exception()


if __name__ == "__main__":
    key = jax.random.PRNGKey(0)
    configs = [
        (200, 32, 4),   # D=32 -> 4 rows lane-packed per vreg; ragged N (padding)
        (96, 96, 3),    # 128 % 96 != 0 -> unpacked (pack=1) path
    ]
    for (N, D, S) in configs:
        k1, k2 = jax.random.split(jax.random.fold_in(key, N))
        left = jax.random.normal(k1, (N, D), dtype=jnp.float32)
        right = jax.random.normal(k2, (N, D), dtype=jnp.float32)

        # Mode 1: plain per-pair dot product (prod_aggr=None)
        out = dot_forward(left, right, r_id=None)
        jax.block_until_ready(out)
        ref = dot_reference(left, right)
        assert out.shape == (N,)
        assert jnp.allclose(out, ref, atol=1e-4, rtol=1e-4), ("plain", N, D)

        # Mode 2: slot-wise variants
        for aggr in ("sum", "mean", "max", "all"):
            o = dot_forward(left, right, r_id=None, slot_num=S, prod_aggr=aggr)
            jax.block_until_ready(o)
            r = dot_reference(left, right, slot_num=S, prod_aggr=aggr)
            assert jnp.allclose(o, r, atol=1e-4, rtol=1e-4), (aggr, N, D)

        # sigmoid='before' path
        o = dot_forward(left, right, r_id=None, slot_num=S, prod_aggr="mean",
                        sigmoid="before")
        jax.block_until_ready(o)
        r = dot_reference(left, right, slot_num=S, prod_aggr="mean",
                          sigmoid="before")
        assert jnp.allclose(o, r, atol=1e-4, rtol=1e-4), ("sig-before", N, D)

    print("KERNEL_OK")
</pallas_src>

<mosaic_0001>
module attributes {stable_mosaic.version = 11 : i64} {
  func.func @_dot_kernel(%arg0: i32, %arg1: memref<56x128xf32, #tpu.memory_space<vmem>>, %arg2: memref<56x128xf32, #tpu.memory_space<vmem>>, %arg3: memref<128x4xf32, #tpu.memory_space<vmem>>, %arg4: memref<56x4xf32, #tpu.memory_space<vmem>>) attributes {dimension_semantics = [#tpu.dimension_semantics<parallel>], iteration_bounds = array<i64: 1>, scalar_prefetch = 0 : i64, scratch_operands = 0 : i64, tpu.core_type = #tpu.core_type<tc>, window_params = [{transform_indices = @transform_0, window_bounds = array<i64: 56, 128>}, {transform_indices = @transform_1, window_bounds = array<i64: 56, 128>}, {pipeline_mode = #tpu.pipeline_mode<synchronous>, transform_indices = @transform_2, window_bounds = array<i64: 128, 4>}, {transform_indices = @transform_3, window_bounds = array<i64: 56, 4>}]} {
    %c0 = arith.constant 0 : index
    %c0_0 = arith.constant 0 : index
    %0 = vector.load %arg1[%c0, %c0_0] : memref<56x128xf32, #tpu.memory_space<vmem>>, vector<56x128xf32>
    %c0_1 = arith.constant 0 : index
    %c0_2 = arith.constant 0 : index
    %1 = vector.load %arg2[%c0_1, %c0_2] : memref<56x128xf32, #tpu.memory_space<vmem>>, vector<56x128xf32>
    %2 = arith.mulf %0, %1 : vector<56x128xf32>
    %c0_3 = arith.constant 0 : index
    %c0_4 = arith.constant 0 : index
    %3 = vector.load %arg3[%c0_3, %c0_4] : memref<128x4xf32, #tpu.memory_space<vmem>>, vector<128x4xf32>
    %cst = arith.constant dense<0.000000e+00> : vector<56x4xf32>
    %4 = tpu.matmul %2, %3, %cst {dimension_numbers = #tpu.dot_dimension_numbers<[1], [0], [0], [1], [0, 0, 1, 1], [], []>, precision = #tpu.contract_precision<fp32>} : vector<56x128xf32>, vector<128x4xf32>, vector<56x4xf32> -> vector<56x4xf32>
    %c0_5 = arith.constant 0 : index
    %c0_6 = arith.constant 0 : index
    %5 = vector.load %arg4[%c0_5, %c0_6] : memref<56x4xf32, #tpu.memory_space<vmem>>, vector<56x4xf32>
    tpu.vector_store %arg4[%c0_5, %c0_6], %4 {strides = array<i32>} : memref<56x4xf32, #tpu.memory_space<vmem>>, vector<56x4xf32>,
    return
  }
  func.func @transform_0(%arg0: i32) -> (i32, i32) {
    %c0_i32 = arith.constant 0 : i32
    %c0_i32_0 = arith.constant 0 : i32
    return %arg0, %c0_i32 : i32, i32
  }
  func.func @transform_1(%arg0: i32) -> (i32, i32) {
    %c0_i32 = arith.constant 0 : i32
    %c0_i32_0 = arith.constant 0 : i32
    return %arg0, %c0_i32 : i32, i32
  }
  func.func @transform_2(%arg0: i32) -> (i32, i32) {
    %c0_i32 = arith.constant 0 : i32
    %c0_i32_0 = arith.constant 0 : i32
    %c0_i32_1 = arith.constant 0 : i32
    return %c0_i32, %c0_i32_0 : i32, i32
  }
  func.func @transform_3(%arg0: i32) -> (i32, i32) {
    %c0_i32 = arith.constant 0 : i32
    %c0_i32_0 = arith.constant 0 : i32
    return %arg0, %c0_i32 : i32, i32
  }
}

</mosaic_0001>

<bundles_post_ra>
// kernel: tpu_custom_call.1
= control target key start
LH: loop header
LB: loop body
LE: loop exit
PB: predicated region body
PF: predicated region fallthrough
CT: control target
= control target key end

     0   :  { %v2244_v0 = vmov 0.0|0.0   ;;  %vm1629_vm0 = vmmov 0   ;;  %v2246_v8 = vmov 0.0   ;;  %vm950_vm1 = vcmask 31744   ;;  %s2230_s2 = inlined_call_operand.vmem [shape: f32[128,4], index: 2, kind: input, shape index: {}]   ;;  %s2231_s0 = inlined_call_operand.vmem [shape: f32[56,128], index: 0, kind: input, shape index: {}]   ;;  %s2232_s1 = inlined_call_operand.vmem [shape: f32[56,128], index: 1, kind: input, shape index: {}]   ;;  %s2233_s3 = inlined_call_operand.vmem [shape: f32[56,4], index: 3, kind: output, shape index: {}]  }
   0x1   :  { %1418 = vmatprep.subr.bf16.mxu1 %v2244_v0  ;;  %1490 = vmatprep.subr.bf16.mxu0 %v2244_v0  ;;  %v35_v1 = vld [vmem:[%s2230_s2] sm:$0xff]  ;;  %v36_v2 = vld [vmem:[%s2230_s2 + $0x8] sm:$0xff]  ;;  %v37_v3 = vld [vmem:[%s2230_s2 + $0x10] sm:$0xff] }
   0x2   :  { %v52_v4 = vand.u32 4294901760, %v35_v1  ;;  %v55_v5 = vand.u32 4294901760, %v36_v2  ;;  %v1665_v6 = vld [vmem:[%s2230_s2 + $0x18] sm:$0xff]  ;;  %v58_v7 = vand.u32 4294901760, %v37_v3  ;;  %1132 = vmatprep.mubr.msk.f32.mxu1 %vm1629_vm0, %v2246_v8  ;;  %1291 = vmatprep.mubr.msk.f32.mxu0 %vm1629_vm0, %v2246_v8  ;;  %v1675_v10 = vld [vmem:[%s2230_s2 + $0x20] sm:$0xff]  ;;  %v1680_v11 = vld [vmem:[%s2230_s2 + $0x28] sm:$0xff] }
   0x3   :  { %v61_v9 = vand.u32 4294901760, %v1665_v6  ;;  %v64_v14 = vand.u32 4294901760, %v1675_v10  ;;  %v67_v15 = vand.u32 4294901760, %v1680_v11  ;;  %v1695_v16 = vld [vmem:[%s2230_s2 + $0x30] sm:$0xff]  ;;  %v1700_v17 = vld [vmem:[%s2230_s2 + $0x38] sm:$0xff]  ;;  %v14_v21 = vld [vmem:[%s2231_s0] sm:$0xff] }
   0x4   :  { %v1682_v12 = vpack.c.bf16 %v55_v5, %v52_v4  ;;  %v70_v19 = vand.u32 4294901760, %v1695_v16  ;;  %v73_v20 = vand.u32 4294901760, %v1700_v17  ;;  %v21_v22 = vld [vmem:[%s2232_s1] sm:$0xff]  ;;  %v1728_v24 = vld [vmem:[%s2230_s2 + $0x48] sm:$0xff]  ;;  %v1746_v31 = vsub.f32 %v35_v1, %v52_v4  ;;  %v1753_v32 = vld [vmem:[%s2230_s2 + $0x50] sm:$0xff] }
   0x5   :  { %v1686_v13 = vpack.c.bf16 %v61_v9, %v58_v7  ;;  %v1708_v18 = vpack.c.bf16 %v67_v15, %v64_v14  ;;  %v1723_v23 = vld [vmem:[%s2230_s2 + $0x40] sm:$0xff]  ;;  %v28_v25 = vmul.f32 %v21_v22, %v14_v21  ;;  %v15_v26 = vld [vmem:[%s2231_s0 + $0x8] sm:$0xff]  ;;  %v79_v30 = vand.u32 4294901760, %v1728_v24  ;;  %v1758_v33 = vld [vmem:[%s2230_s2 + $0x58] sm:$0xff] }
   0x6   :  { %1420 = vmatpush3.bf16.msra.mxu1 %v1682_v12  ;;  %1492 = vmatpush3.bf16.msra.mxu0 %v1682_v12  ;;  %v22_v27 = vld [vmem:[%s2232_s1 + $0x8] sm:$0xff]  ;;  %v1742_v28 = vpack.c.bf16 %v73_v20, %v70_v19  ;;  %v76_v29 = vand.u32 4294901760, %v1723_v23  ;;  %v1760_v34 = vsub.f32 %v36_v2, %v55_v5  ;;  %v16_v37 = vld [vmem:[%s2231_s0 + $0x10] sm:$0xff]  ;;  %v82_v40 = vand.u32 4294901760, %v1753_v32  ;;  %v1787_v43 = vld [vmem:[%s2230_s2 + $0x60] sm:$0xff] }
   0x7   :  { %1421 = vmatprep.subr.bf16.mxu1 %v2244_v0  ;;  %1493 = vmatprep.subr.bf16.mxu0 %v2244_v0  ;;  %v29_v35 = vmul.f32 %v22_v27, %v15_v26  ;;  %v1762_v36 = vand.u32 4294901760, %v28_v25  ;;  %v23_v38 = vld [vmem:[%s2232_s1 + $0x10] sm:$0xff]  ;;  %v85_v41 = vand.u32 4294901760, %v1758_v33  ;;  %v1780_v42 = vsub.f32 %v37_v3, %v58_v7  ;;  %v1792_v44 = vld [vmem:[%s2230_s2 + $0x68] sm:$0xff]  ;;  %v17_v54 = vld [vmem:[%s2231_s0 + $0x18] sm:$0xff] }
   0x8   :  { %v1776_v39 = vpack.c.bf16 %v79_v30, %v76_v29  ;;  %v205_v45 = vand.u32 4294901760, %v1746_v31  ;;  %v212_v46 = vand.u32 4294901760, %v1760_v34  ;;  %v30_v48 = vmul.f32 %v23_v38, %v16_v37  ;;  %v24_v55 = vld [vmem:[%s2232_s1 + $0x18] sm:$0xff]  ;;  %v1825_v56 = vld [vmem:[%s2230_s2 + $0x70] sm:$0xff] }
   0x9   :  { %v1796_v47 = vand.u32 4294901760, %v29_v35  ;;  %v1799_v49 = vsub.f32 %v28_v25, %v1762_v36  ;;  %v1802_v50 = vsub.f32 %v1665_v6, %v61_v9  ;;  %v1810_v51 = vpack.c.bf16 %v85_v41, %v82_v40  ;;  %v1830_v57 = vld [vmem:[%s2230_s2 + $0x78] sm:$0xff]  ;;  %v18_v9 = vld [vmem:[%s2231_s0 + $0x20] sm:$0xff] }
   0xa   :  { %1423 = vmatpush3.bf16.msra.mxu1 %v1686_v13  ;;  %1495 = vmatpush3.bf16.msra.mxu0 %v1686_v13  ;;  %v88_v52 = vand.u32 4294901760, %v1787_v43  ;;  %v91_v53 = vand.u32 4294901760, %v1792_v44  ;;  %v206_v58 = vsub.f32 %v1746_v31, %v205_v45  ;;  %v219_v59 = vand.u32 4294901760, %v1780_v42 }
   0xb   :  { %1424 = vmatprep.subr.bf16.mxu1 %v2244_v0  ;;  %1496 = vmatprep.subr.bf16.mxu0 %v2244_v0  ;;  %v1837_v60 = vsub.f32 %v1675_v10, %v64_v14  ;;  %v213_v61 = vsub.f32 %v1760_v34, %v212_v46  ;;  %v1841_v62 = vsub.f32 %v29_v35, %v1796_v47  ;;  %v1843_v63 = vand.u32 4294901760, %v30_v48  ;;  %v25_v10 = vld [vmem:[%s2232_s1 + $0x20] sm:$0xff] }
   0xc   :  { %v1848_v1 = vsub.f32 %v1680_v11, %v67_v15  ;;  %v134_v2 = vand.u32 4294901760, %v1799_v49  ;;  %v31_v3 = vmul.f32 %v24_v55, %v17_v54  ;;  %v1857_v4 = vpack.c.bf16 %v91_v53, %v88_v52  ;;  %v19_v54 = vld [vmem:[%s2231_s0 + $0x28] sm:$0xff] }
   0xd   :  { %v2235_v5 = vand.u32 4294901760, %v1825_v56  ;;  %v2234_v6 = vand.u32 4294901760, %v1830_v57  ;;  %v226_v7 = vand.u32 4294901760, %v1802_v50  ;;  %v207_v11 = vand.u32 4294901760, %v206_v58 }
   0xe   :  { %1426 = vmatpush3.bf16.msra.mxu1 %v1708_v18  ;;  %1498 = vmatpush3.bf16.msra.mxu0 %v1708_v18  ;;  %v220_v14 = vsub.f32 %v1780_v42, %v219_v59  ;;  %v214_v15 = vand.u32 4294901760, %v213_v61  ;;  %v2238_v21 = vand.u32 4294901760, %v1841_v62  ;;  %v2237_v22 = vand.u32 4294901760, %v1837_v60 }
   0xf   :  { %1427 = vmatprep.subr.bf16.mxu1 %v2244_v0  ;;  %1499 = vmatprep.subr.bf16.mxu0 %v2244_v0  ;;  %v1874_v25 = vsub.f32 %v30_v48, %v1843_v63  ;;  %v1879_v26 = vsub.f32 %v1695_v16, %v70_v19  ;;  %v135_v27 = vsub.f32 %v1799_v49, %v134_v2  ;;  %v1882_v35 = vand.u32 4294901760, %v31_v3 }
  0x10   :  { %v32_v37 = vmul.f32 %v25_v10, %v18_v9  ;;  %v1887_v38 = vsub.f32 %v1700_v17, %v73_v20  ;;  %v1895_v16 = vpack.c.bf16 %v2234_v6, %v2235_v5  ;;  %v227_v19 = vsub.f32 %v1802_v50, %v226_v7  ;;  %v26_v17 = vld [vmem:[%s2232_s1 + $0x28] sm:$0xff] }
  0x11   :  { %v2236_v48 = vand.u32 4294901760, %v1848_v1  ;;  %v1908_v20 = vsub.f32 %v1723_v23, %v76_v29  ;;  %v1913_v55 = vsub.f32 %v1728_v24, %v79_v30  ;;  %v1515_v58 = vpack.c.bf16 %v212_v46, %v205_v45 }
  0x12   :  { %1429 = vmatpush3.bf16.msra.mxu1 %v1742_v28  ;;  %1501 = vmatpush3.bf16.msra.mxu0 %v1742_v28  ;;  %v221_v61 = vand.u32 4294901760, %v220_v14  ;;  %v1443_v9 = vpack.c.bf16 %v214_v15, %v207_v11  ;;  %v145_v10 = vsub.f32 %v1841_v62, %v2238_v21  ;;  %v234_v23 = vsub.f32 %v1837_v60, %v2237_v22  ;;  %v27_v15 = vld [vmem:[%s2232_s1 + $0x30] sm:$0xff] }
  0x13   :  { %1430 = vmatprep.subr.bf16.mxu1 %v2244_v0  ;;  %1502 = vmatprep.subr.bf16.mxu0 %v2244_v0  ;;  %v2243_v29 = vand.u32 4294901760, %v1874_v25  ;;  %v136_v6 = vand.u32 4294901760, %v135_v27  ;;  %v1925_v24 = vsub.f32 %v31_v3, %v1882_v35  ;;  %v1927_v30 = vand.u32 4294901760, %v32_v37  ;;  %v20_v3 = vld [vmem:[%s2231_s0 + $0x30] sm:$0xff] }
  0x14   :  { %v33_v5 = vmul.f32 %v26_v17, %v19_v54  ;;  %v228_v45 = vand.u32 4294901760, %v227_v19  ;;  %v241_v46 = vsub.f32 %v1848_v1, %v2236_v48  ;;  %v2242_v11 = vand.u32 4294901760, %v1879_v26 }
  0x15   :  { %v2241_v14 = vand.u32 4294901760, %v1887_v38  ;;  %v1945_v27 = vsub.f32 %v1753_v32, %v82_v40  ;;  %v1950_v19 = vsub.f32 %v1758_v33, %v85_v41  ;;  %v1518_v54 = vpack.c.bf16 %v226_v7, %v219_v59 }
  0x16   :  { %1432 = vmatpush3.bf16.msra.mxu1 %v1776_v39  ;;  %1504 = vmatpush3.bf16.msra.mxu0 %v1776_v39  ;;  %v2240_v17 = vand.u32 4294901760, %v1908_v20  ;;  %v146_v48 = vand.u32 4294901760, %v145_v10  ;;  %v235_v22 = vand.u32 4294901760, %v234_v23  ;;  %v155_v21 = vsub.f32 %v1874_v25, %v2243_v29 }
  0x17   :  { %1433 = vmatprep.subr.bf16.mxu1 %v2244_v0  ;;  %1505 = vmatprep.subr.bf16.mxu0 %v2244_v0  ;;  %v2239_v32 = vand.u32 4294901760, %v1913_v55  ;;  %v164_v33 = vand.u32 4294901760, %v1925_v24  ;;  %v1961_v40 = vsub.f32 %v32_v37, %v1927_v30  ;;  %v1963_v41 = vand.u32 4294901760, %v33_v5 }
  0x18   :  { %v34_v59 = vmul.f32 %v27_v15, %v20_v3  ;;  %v1446_v7 = vpack.c.bf16 %v228_v45, %v221_v61  ;;  %v242_v10 = vand.u32 4294901760, %v241_v46  ;;  %v248_v23 = vsub.f32 %v1879_v26, %v2242_v11 }
  0x19   :  { %v1979_v37 = vsub.f32 %v1792_v44, %v91_v53  ;;  %v269_v44 = vsub.f32 %v1913_v55, %v2239_v32  ;;  %v282_v53 = vand.u32 4294901760, %v1950_v19  ;;  %v2249_v61 = vand.u32 4294901760, %v1841_v62 }
  0x1a   :  { %1435 = vmatpush3.bf16.msra.mxu1 %v1810_v51  ;;  %1507 = vmatpush3.bf16.msra.mxu0 %v1810_v51  ;;  %v174_v45 = vand.u32 4294901760, %v1961_v40  ;;  %v2000_v46 = vsub.f32 %v33_v5, %v1963_v41  ;;  %v1449_v3 = vpack.c.bf16 %v242_v10, %v235_v22  ;;  %v2251_v15 = vand.u32 4294901760, %v1837_v60 }
  0x1b   :  { %1436 = vmatprep.subr.bf16.mxu1 %v2244_v0  ;;  %1508 = vmatprep.subr.bf16.mxu0 %v2244_v0  ;;  %v2252_v32 = vand.u32 4294901760, %v1848_v1  ;;  %v2254_v5 = vand.u32 4294901760, %v1830_v57 }
  0x1c   :  { %2250 = vst [vmem:[#allocation2_spill] sm:$0xff] %v2000_v46  ;;  %v175_v10 = vsub.f32 %v1961_v40, %v174_v45 }
  0x1d   :  { %v2016_v29 = vsub.f32 %v1830_v57, %v2254_v5  ;;  %v2255_v57 = vand.u32 4294901760, %v1874_v25  ;;  %v296_v5 = vand.u32 4294901760, %v1979_v37 }
  0x1e   :  { %1438 = vmatpush3.bf16.msra.mxu1 %v1857_v4  ;;  %1510 = vmatpush3.bf16.msra.mxu0 %v1857_v4 }
  0x1f   :  { %1439 = vmatprep.subr.bf16.mxu1 %v2244_v0  ;;  %1511 = vmatprep.subr.bf16.mxu0 %v2244_v0 }
  0x22   :  { %1441 = vmatpush3.bf16.msra.mxu1 %v1895_v16  ;;  %1513 = vmatpush3.bf16.msra.mxu0 %v1895_v16 }
  0x23   :  { %1442 = vmatprep.subr.bf16.mxu1 %v2244_v0  ;;  %1514 = vmatprep.subr.bf16.mxu0 %v2244_v0 }
  0x25   :  { %1133 = vmatmul.mubr.f32.vlgmr.msra.gmra.mrb[0].mxu1 %v136_v6  ;;  %1292 = vmatmul.mubr.f32.vlgmr.msra.gmra.mrb[0].mxu0 %v134_v2  ;;  %v255_v2 = vsub.f32 %v1887_v38, %v2241_v14  ;;  %v1974_v6 = vsub.f32 %v1787_v43, %v88_v52  ;;  %v156_v43 = vand.u32 4294901760, %v155_v21  ;;  %v275_v52 = vand.u32 4294901760, %v1945_v27 }
  0x26   :  { %1444 = vmatpush3.bf16.msra.mxu1 %v1443_v9  ;;  %1516 = vmatpush3.bf16.msra.mxu0 %v1515_v58  ;;  %v262_v58 = vsub.f32 %v1908_v20, %v2240_v17  ;;  %v165_v9 = vsub.f32 %v1925_v24, %v164_v33  ;;  %v2002_v21 = vand.u32 4294901760, %v34_v59  ;;  %v249_v17 = vand.u32 4294901760, %v248_v23 }
  0x27   :  { %1445 = vmatprep.subr.bf16.mxu1 %v2244_v0  ;;  %1517 = vmatprep.subr.bf16.mxu0 %v2244_v0  ;;  %v256_v14 = vand.u32 4294901760, %v255_v2  ;;  %v184_v23 = vand.u32 4294901760, %v2000_v46 }
  0x28   :  { %1135 = vmatprep.mubr.msk.f32.mxu1 %vm1629_vm0, %v2246_v8  ;;  %1294 = vmatprep.mubr.msk.f32.mxu0 %vm1629_vm0, %v2246_v8  ;;  %v263_v22 = vand.u32 4294901760, %v262_v58  ;;  %v2031_v2 = vsub.f32 %v34_v59, %v2002_v21  ;;  %v2259_v59 = vand.u32 4294901760, %v1913_v55 }
  0x29   :  { %1136 = vmatmul.mubr.f32.gmra.mrb[2].mxu1 %v146_v48  ;;  %1295 = vmatmul.mubr.f32.gmra.mrb[2].mxu0 %v2249_v61  ;;  %v1521_v48 = vpack.c.bf16 %v2252_v32, %v2251_v15  ;;  %v2253_v61 = vand.u32 4294901760, %v1825_v56  ;;  %v283_v32 = vsub.f32 %v1950_v19, %v282_v53  ;;  %v1452_v58 = vpack.c.bf16 %v256_v14, %v249_v17 }
  0x2a   :  { %1447 = vmatpush3.bf16.msra.mxu1 %v1446_v7  ;;  %1519 = vmatpush3.bf16.msra.mxu0 %v1518_v54  ;;  %v270_v54 = vand.u32 4294901760, %v269_v44  ;;  %v166_v7 = vand.u32 4294901760, %v165_v9  ;;  %v2256_v44 = vand.u32 4294901760, %v1879_v26  ;;  %v2257_v15 = vand.u32 4294901760, %v1887_v38 }
  0x2b   :  { %v2011_v11 = vsub.f32 %v1825_v56, %v2253_v61  ;;  %1448 = vmatprep.subr.bf16.mxu1 %v2244_v0  ;;  %1520 = vmatprep.subr.bf16.mxu0 %v2244_v0  ;;  %v276_v56 = vsub.f32 %v1945_v27, %v275_v52  ;;  %v2258_v17 = vand.u32 4294901760, %v1908_v20 }
  0x2c   :  { %1138 = vmatprep.mubr.msk.f32.mxu1 %vm1629_vm0, %v2246_v8  ;;  %1297 = vmatprep.mubr.msk.f32.mxu0 %vm1629_vm0, %v2246_v8  ;;  %v1524_v61 = vpack.c.bf16 %v2257_v15, %v2256_v44  ;;  %v1455_v14 = vpack.c.bf16 %v270_v54, %v263_v22  ;;  %v185_v44 = vsub.f32 %v2000_v46, %v184_v23  ;;  %v194_v15 = vand.u32 4294901760, %v2031_v2 }
  0x2d   :  { %1139 = vmatmul.mubr.f32.gmra.mrb[4].mxu1 %v156_v43  ;;  %1298 = vmatmul.mubr.f32.gmra.mrb[4].mxu0 %v2255_v57  ;;  %v289_v43 = vand.u32 4294901760, %v1974_v6  ;;  %v1527_v9 = vpack.c.bf16 %v2259_v59, %v2258_v17  ;;  %v284_v57 = vand.u32 4294901760, %v283_v32  ;;  %v297_v22 = vsub.f32 %v1979_v37, %v296_v5 }
  0x2e   :  { %1450 = vmatpush3.bf16.msra.mxu1 %v1449_v3  ;;  %1522 = vmatpush3.bf16.msra.mxu0 %v1521_v48  ;;  %v277_v3 = vand.u32 4294901760, %v276_v56  ;;  %v176_v48 = vand.u32 4294901760, %v175_v10  ;;  %v303_v54 = vand.u32 4294901760, %v2011_v11  ;;  %v2260_v17 = vmov 0.0|0.0  }
  0x2f   :  { %1451 = vmatprep.subr.bf16.mxu1 %v2244_v0  ;;  %1523 = vmatprep.subr.bf16.mxu0 %v2244_v0  ;;  %v290_v0 = vsub.f32 %v1974_v6, %v289_v43  ;;  %v1530_v32 = vpack.c.bf16 %v282_v53, %v275_v52  ;;  %v195_v10 = vsub.f32 %v2031_v2, %v194_v15 }
  0x30   :  { %1141 = vmatprep.mubr.msk.f32.mxu1 %vm1629_vm0, %v2246_v8  ;;  %1300 = vmatprep.mubr.msk.f32.mxu0 %vm1629_vm0, %v2246_v8  ;;  %v310_v8 = vand.u32 4294901760, %v2016_v29  ;;  %v1458_v56 = vpack.c.bf16 %v284_v57, %v277_v3  ;;  %v304_v59 = vsub.f32 %v2011_v11, %v303_v54  ;;  %v1533_v53 = vpack.c.bf16 %v296_v5, %v289_v43 }
  0x31   :  { %1142 = vmatmul.mubr.f32.gmra.mrb[6].mxu1 %v166_v7  ;;  %1301 = vmatmul.mubr.f32.gmra.mrb[6].mxu0 %v164_v33  ;;  %v2261_v33 = vmov 0.0   ;;  %v186_v7 = vand.u32 4294901760, %v185_v44  ;;  %v196_v52 = vand.u32 4294901760, %v195_v10 }
  0x32   :  { %1453 = vmatpush3.bf16.msra.mxu1 %v1452_v58  ;;  %1525 = vmatpush3.bf16.msra.mxu0 %v1524_v61  ;;  %v291_v58 = vand.u32 4294901760, %v290_v0  ;;  %v298_v61 = vand.u32 4294901760, %v297_v22  ;;  %v311_v46 = vsub.f32 %v2016_v29, %v310_v8 }
  0x33   :  { %1454 = vmatprep.subr.bf16.mxu1 %v2260_v17  ;;  %1526 = vmatprep.subr.bf16.mxu0 %v2260_v17 }
  0x34   :  { %1144 = vmatprep.mubr.msk.f32.mxu1 %vm1629_vm0, %v2261_v33  ;;  %1303 = vmatprep.mubr.msk.f32.mxu0 %vm1629_vm0, %v2261_v33  ;;  %v1461_v0 = vpack.c.bf16 %v298_v61, %v291_v58 }
  0x35   :  { %1145 = vmatmul.mubr.f32.gmra.mrb[8].mxu1 %v176_v48  ;;  %1304 = vmatmul.mubr.f32.gmra.mrb[8].mxu0 %v174_v45  ;;  %v305_v45 = vand.u32 4294901760, %v304_v59 }
  0x36   :  { %1456 = vmatpush3.bf16.msra.mxu1 %v1455_v14  ;;  %1528 = vmatpush3.bf16.msra.mxu0 %v1527_v9  ;;  %v312_v14 = vand.u32 4294901760, %v311_v46  ;;  %v1536_v9 = vpack.c.bf16 %v310_v8, %v303_v54  ;;  %v1467_v46 = vpack.c.bf16 %v1760_v34, %v1746_v31  ;;  %v1470_v8 = vpack.c.bf16 %v1802_v50, %v1780_v42 }
  0x37   :  { %1457 = vmatprep.subr.bf16.mxu1 %v2260_v17  ;;  %1529 = vmatprep.subr.bf16.mxu0 %v2260_v17  ;;  %v1485_v31 = vpack.c.bf16 %v1979_v37, %v1974_v6  ;;  %v1488_v34 = vpack.c.bf16 %v2016_v29, %v2011_v11 }
  0x38   :  { %1147 = vmatprep.mubr.msk.f32.mxu1 %vm1629_vm0, %v2261_v33  ;;  %1306 = vmatprep.mubr.msk.f32.mxu0 %vm1629_vm0, %v2261_v33 }
  0x39   :  { %1148 = vmatmul.mubr.f32.gmra.mrb[10].mxu1 %v186_v7  ;;  %1307 = vmatmul.mubr.f32.gmra.mrb[10].mxu0 %v184_v23  ;;  %v1464_v23 = vpack.c.bf16 %v312_v14, %v305_v45 }
  0x3a   :  { %1459 = vmatpush3.bf16.msra.mxu1 %v1458_v56  ;;  %1531 = vmatpush3.bf16.msra.mxu0 %v1530_v32 }
  0x3b   :  { %1460 = vmatprep.subr.bf16.mxu1 %v2260_v17  ;;  %1532 = vmatprep.subr.bf16.mxu0 %v2260_v17 }
  0x3c   :  { %1150 = vmatprep.mubr.msk.f32.mxu1 %vm1629_vm0, %v2261_v33  ;;  %1309 = vmatprep.mubr.msk.f32.mxu0 %vm1629_vm0, %v2261_v33 }
  0x3d   :  { %1151 = vmatmul.mubr.f32.gmra.mrb[12].mxu1 %v196_v52  ;;  %1310 = vmatmul.mubr.f32.gmra.mrb[12].mxu0 %v194_v15 }
  0x3e   :  { %1462 = vmatpush3.bf16.msra.mxu1 %v1461_v0  ;;  %1534 = vmatpush3.bf16.msra.mxu0 %v1533_v53 }
  0x3f   :  { %1463 = vmatprep.subr.bf16.mxu1 %v2260_v17  ;;  %1535 = vmatprep.subr.bf16.mxu0 %v2260_v17 }
  0x40   :  { %1185 = vmatprep.mubr.msk.f32.mxu1 %vm1629_vm0, %v2261_v33  ;;  %1344 = vmatprep.mubr.msk.f32.mxu0 %vm1629_vm0, %v2261_v33 }
  0x42   :  { %1465 = vmatpush3.bf16.msra.mxu1 %v1464_v23  ;;  %1537 = vmatpush3.bf16.msra.mxu0 %v1536_v9 }
  0x43   :  { %1466 = vmatprep.subr.bf16.mxu1 %v2260_v17  ;;  %1538 = vmatprep.subr.bf16.mxu0 %v2260_v17 }
  0x45   :  { %1186 = vmatmul.mubr.f32.vlgmr.msra.gmra.mrb[0].mxu1 %v1762_v36  ;;  %1345 = vmatmul.mubr.f32.vlgmr.msra.gmra.mrb[0].mxu0 %v1762_v36 }
  0x46   :  { %1468 = vmatpush3.bf16.msra.mxu1 %v1467_v46  ;;  %1540 = vmatpush3.bf16.msra.mxu0 %v1682_v12  ;;  %v1473_v12 = vpack.c.bf16 %v1848_v1, %v1837_v60 }
  0x47   :  { %1469 = vmatprep.subr.bf16.mxu1 %v2260_v17  ;;  %1541 = vmatprep.subr.bf16.mxu0 %v2260_v17 }
  0x48   :  { %1188 = vmatprep.mubr.msk.f32.mxu1 %vm1629_vm0, %v2261_v33  ;;  %1347 = vmatprep.mubr.msk.f32.mxu0 %vm1629_vm0, %v2261_v33 }
  0x49   :  { %1189 = vmatmul.mubr.f32.gmra.mrb[2].mxu1 %v1796_v47  ;;  %1348 = vmatmul.mubr.f32.gmra.mrb[2].mxu0 %v1796_v47 }
  0x4a   :  { %1471 = vmatpush3.bf16.msra.mxu1 %v1470_v8  ;;  %1543 = vmatpush3.bf16.msra.mxu0 %v1686_v13  ;;  %v1476_v13 = vpack.c.bf16 %v1887_v38, %v1879_v26 }
  0x4b   :  { %1472 = vmatprep.subr.bf16.mxu1 %v2260_v17  ;;  %1544 = vmatprep.subr.bf16.mxu0 %v2260_v17 }
  0x4c   :  { %1191 = vmatprep.mubr.msk.f32.mxu1 %vm1629_vm0, %v2261_v33  ;;  %1350 = vmatprep.mubr.msk.f32.mxu0 %vm1629_vm0, %v2261_v33 }
  0x4d   :  { %1192 = vmatmul.mubr.f32.gmra.mrb[4].mxu1 %v1843_v63  ;;  %1351 = vmatmul.mubr.f32.gmra.mrb[4].mxu0 %v1843_v63 }
  0x4e   :  { %1474 = vmatpush3.bf16.msra.mxu1 %v1473_v12  ;;  %1546 = vmatpush3.bf16.msra.mxu0 %v1708_v18  ;;  %v1479_v18 = vpack.c.bf16 %v1913_v55, %v1908_v20 }
  0x4f   :  { %1475 = vmatprep.subr.bf16.mxu1 %v2260_v17  ;;  %1547 = vmatprep.subr.bf16.mxu0 %v2260_v17 }
  0x50   :  { %1194 = vmatprep.mubr.msk.f32.mxu1 %vm1629_vm0, %v2261_v33  ;;  %1353 = vmatprep.mubr.msk.f32.mxu0 %vm1629_vm0, %v2261_v33 }
  0x51   :  { %1195 = vmatmul.mubr.f32.gmra.mrb[6].mxu1 %v1882_v35  ;;  %1354 = vmatmul.mubr.f32.gmra.mrb[6].mxu0 %v1882_v35 }
  0x52   :  { %1477 = vmatpush3.bf16.msra.mxu1 %v1476_v13  ;;  %1549 = vmatpush3.bf16.msra.mxu0 %v1742_v28  ;;  %v1482_v28 = vpack.c.bf16 %v1950_v19, %v1945_v27 }
  0x53   :  { %1478 = vmatprep.subr.bf16.mxu1 %v2260_v17  ;;  %1550 = vmatprep.subr.bf16.mxu0 %v2260_v17 }
  0x54   :  { %1197 = vmatprep.mubr.msk.f32.mxu1 %vm1629_vm0, %v2261_v33  ;;  %1356 = vmatprep.mubr.msk.f32.mxu0 %vm1629_vm0, %v2261_v33 }
  0x55   :  { %1198 = vmatmul.mubr.f32.gmra.mrb[8].mxu1 %v1927_v30  ;;  %1357 = vmatmul.mubr.f32.gmra.mrb[8].mxu0 %v1927_v30 }
  0x56   :  { %1480 = vmatpush3.bf16.msra.mxu1 %v1479_v18  ;;  %1552 = vmatpush3.bf16.msra.mxu0 %v1776_v39 }
  0x57   :  { %1481 = vmatprep.subr.bf16.mxu1 %v2260_v17  ;;  %1553 = vmatprep.subr.bf16.mxu0 %v2260_v17 }
  0x58   :  { %1200 = vmatprep.mubr.msk.f32.mxu1 %vm1629_vm0, %v2261_v33  ;;  %1359 = vmatprep.mubr.msk.f32.mxu0 %vm1629_vm0, %v2261_v33 }
  0x59   :  { %1201 = vmatmul.mubr.f32.gmra.mrb[10].mxu1 %v1963_v41  ;;  %1360 = vmatmul.mubr.f32.gmra.mrb[10].mxu0 %v1963_v41 }
  0x5a   :  { %1483 = vmatpush3.bf16.msra.mxu1 %v1482_v28  ;;  %1555 = vmatpush3.bf16.msra.mxu0 %v1810_v51 }
  0x5b   :  { %1484 = vmatprep.subr.bf16.mxu1 %v2260_v17  ;;  %1556 = vmatprep.subr.bf16.mxu0 %v2260_v17 }
  0x5c   :  { %1203 = vmatprep.mubr.msk.f32.mxu1 %vm1629_vm0, %v2261_v33  ;;  %1362 = vmatprep.mubr.msk.f32.mxu0 %vm1629_vm0, %v2261_v33 }
  0x5d   :  { %1204 = vmatmul.mubr.f32.gmra.mrb[12].mxu1 %v2002_v21  ;;  %1363 = vmatmul.mubr.f32.gmra.mrb[12].mxu0 %v2002_v21 }
  0x5e   :  { %1486 = vmatpush3.bf16.msra.mxu1 %v1485_v31  ;;  %1558 = vmatpush3.bf16.msra.mxu0 %v1857_v4 }
  0x5f   :  { %1487 = vmatprep.subr.bf16.mxu1 %v2260_v17  ;;  %1559 = vmatprep.subr.bf16.mxu0 %v2260_v17 }
  0x60   :  { %1238 = vmatprep.mubr.msk.f32.mxu1 %vm1629_vm0, %v2261_v33  ;;  %1397 = vmatprep.mubr.msk.f32.mxu0 %vm1629_vm0, %v2261_v33 }
  0x62   :  { %1489 = vmatpush3.bf16.msra.mxu1 %v1488_v34  ;;  %1561 = vmatpush3.bf16.msra.mxu0 %v1895_v16 }
  0x65   :  { %1239 = vmatmul.mubr.f32.vlgmr.msra.gmra.mrb[0].mxu1 %v1799_v49  ;;  %1398 = vmatmul.mubr.f32.vlgmr.msra.gmra.mrb[0].mxu0 %v1762_v36  ;;  %v2262_v36 = vld [vmem:[#allocation2_spill] sm:$0xff] }
  0x66   :  { %1241 = vmatprep.mubr.msk.f32.mxu1 %vm1629_vm0, %v2261_v33  ;;  %1400 = vmatprep.mubr.msk.f32.mxu0 %vm1629_vm0, %v2261_v33 }
  0x69   :  { %1242 = vmatmul.mubr.f32.gmra.mrb[2].mxu1 %v1841_v62  ;;  %1401 = vmatmul.mubr.f32.gmra.mrb[2].mxu0 %v1796_v47 }
  0x6a   :  { %1244 = vmatprep.mubr.msk.f32.mxu1 %vm1629_vm0, %v2261_v33  ;;  %1403 = vmatprep.mubr.msk.f32.mxu0 %vm1629_vm0, %v2261_v33 }
  0x6d   :  { %1245 = vmatmul.mubr.f32.gmra.mrb[4].mxu1 %v1874_v25  ;;  %1404 = vmatmul.mubr.f32.gmra.mrb[4].mxu0 %v1843_v63 }
  0x6e   :  { %1247 = vmatprep.mubr.msk.f32.mxu1 %vm1629_vm0, %v2261_v33  ;;  %1406 = vmatprep.mubr.msk.f32.mxu0 %vm1629_vm0, %v2261_v33 }
  0x71   :  { %1248 = vmatmul.mubr.f32.gmra.mrb[6].mxu1 %v1925_v24  ;;  %1407 = vmatmul.mubr.f32.gmra.mrb[6].mxu0 %v1882_v35 }
  0x72   :  { %1250 = vmatprep.mubr.msk.f32.mxu1 %vm1629_vm0, %v2261_v33  ;;  %1409 = vmatprep.mubr.msk.f32.mxu0 %vm1629_vm0, %v2261_v33 }
  0x75   :  { %1251 = vmatmul.mubr.f32.gmra.mrb[8].mxu1 %v1961_v40  ;;  %1410 = vmatmul.mubr.f32.gmra.mrb[8].mxu0 %v1927_v30 }
  0x76   :  { %1253 = vmatprep.mubr.msk.f32.mxu1 %vm1629_vm0, %v2261_v33  ;;  %1412 = vmatprep.mubr.msk.f32.mxu0 %vm1629_vm0, %v2261_v33 }
  0x79   :  { %1254 = vmatmul.mubr.f32.gmra.mrb[10].mxu1 %v2262_v36  ;;  %1413 = vmatmul.mubr.f32.gmra.mrb[10].mxu0 %v1963_v41 }
  0x7a   :  { %1256 = vmatprep.mubr.msk.f32.mxu1 %vm1629_vm0, %v2261_v33  ;;  %1415 = vmatprep.mubr.msk.f32.mxu0 %vm1629_vm0, %v2261_v33 }
  0x7d   :  { %1257 = vmatmul.mubr.f32.gmra.mrb[12].mxu1 %v2031_v2  ;;  %1416 = vmatmul.mubr.f32.gmra.mrb[12].mxu0 %v2002_v21 }
 0x138   :  { %v489_v39 = vpop.f32.mrb[0].mxu1  ;;  %v910_v42 = vpop.f32.mrb[0].mxu0 }
 0x139   :  { %v1562_v47 = vadd.f32 %v910_v42, %v489_v39  ;;  %v1240_v49 = vpop.f32.mrb[1].mxu1  ;;  %v1399_v50 = vpop.f32.mrb[1].mxu0 }
 0x13b   :  { %951 = vst.msk [vmem:[%s2233_s3] sm:$0xff] %vm950_vm1, %v1562_v47 }
 0x13c   :  { %v496_v51 = vpop.f32.mrb[2].mxu1  ;;  %v916_v60 = vpop.f32.mrb[2].mxu0 }
 0x13d   :  { %v1563_v62 = vadd.f32 %v916_v60, %v496_v51  ;;  %v1243_v63 = vpop.f32.mrb[3].mxu1  ;;  %v1402_v1 = vpop.f32.mrb[3].mxu0 }
 0x13f   :  { %952 = vst.msk [vmem:[%s2233_s3 + $0x8] sm:$0xff] %vm950_vm1, %v1563_v62 }
 0x140   :  { %v503_v4 = vpop.f32.mrb[4].mxu1  ;;  %v922_v25 = vpop.f32.mrb[4].mxu0 }
 0x141   :  { %v1564_v26 = vadd.f32 %v922_v25, %v503_v4  ;;  %v1246_v35 = vpop.f32.mrb[5].mxu1  ;;  %v1405_v38 = vpop.f32.mrb[5].mxu0 }
 0x143   :  { %953 = vst.msk [vmem:[%s2233_s3 + $0x10] sm:$0xff] %vm950_vm1, %v1564_v26 }
 0x144   :  { %v510_v16 = vpop.f32.mrb[6].mxu1  ;;  %v928_v20 = vpop.f32.mrb[6].mxu0 }
 0x145   :  { %v1565_v55 = vadd.f32 %v928_v20, %v510_v16  ;;  %v1249_v29 = vpop.f32.mrb[7].mxu1  ;;  %v1408_v24 = vpop.f32.mrb[7].mxu0 }
 0x147   :  { %954 = vst.msk [vmem:[%s2233_s3 + $0x18] sm:$0xff] %vm950_vm1, %v1565_v55 }
 0x148   :  { %v517_v30 = vpop.f32.mrb[8].mxu1  ;;  %v934_v11 = vpop.f32.mrb[8].mxu0 }
 0x149   :  { %v1566_v27 = vadd.f32 %v934_v11, %v517_v30  ;;  %v1252_v19 = vpop.f32.mrb[9].mxu1  ;;  %v1411_v40 = vpop.f32.mrb[9].mxu0 }
 0x14b   :  { %955 = vst.msk [vmem:[%s2233_s3 + $0x20] sm:$0xff] %vm950_vm1, %v1566_v27 }
 0x14c   :  { %v524_v41 = vpop.f32.mrb[10].mxu1  ;;  %v940_v6 = vpop.f32.mrb[10].mxu0 }
 0x14d   :  { %v1567_v37 = vadd.f32 %v940_v6, %v524_v41  ;;  %v1255_v21 = vpop.f32.mrb[11].mxu1  ;;  %v1414_v2 = vpop.f32.mrb[11].mxu0 }
 0x14f   :  { %956 = vst.msk [vmem:[%s2233_s3 + $0x28] sm:$0xff] %vm950_vm1, %v1567_v37 }
 0x150   :  { %v531_v43 = vpop.f32.mrb[12].mxu1  ;;  %v946_v5 = vpop.f32.mrb[12].mxu0 }
 0x151   :  { %v1568_v3 = vadd.f32 %v946_v5, %v531_v43  ;;  %v1258_v48 = vpop.f32.mrb[13].mxu1  ;;  %v1417_v57 = vpop.f32.mrb[13].mxu0 }
 0x153   :  { %957 = vst.msk [vmem:[%s2233_s3 + $0x30] sm:$0xff] %vm950_vm1, %v1568_v3 }

</bundles_post_ra>
